<compile_context>
chip_gen: v6e
topology: v6e:2x2x1
jax: 0.10.0
libtpu: 0.0.40
codegen_flags: <defaults>
</compile_context>

<pallas_src>
import functools

import jax
import jax.numpy as jnp
from jax.experimental import pallas as pl
from jax.experimental.pallas import tpu as pltpu


_VMEM_LIMIT = 48 << 20           # explicit scoped-VMEM limit (< v7x 64 MiB physical)
_STATS_TILE_BUDGET = 8 << 20     # phase 1: only the input tile is double-buffered
_CENTER_TILE_BUDGET = 6 << 20    # phase 2: in+out double-buffered => ~4x footprint


# ----------------------------------------------------------------------------
# Tile-size selection
# ----------------------------------------------------------------------------
def _pick_tiles(n, l, itemsize, budget_bytes):
    """Tile dims (tn, tl) for an (n, l) lane-dense slab.

    Block-shape rule: each of the last two block dims must be a multiple of
    (8, 128) or span the full array dim.  Grids use pl.cdiv, so n / l need
    not divide evenly (tails handled by masking / writeback clipping), which
    keeps the step count near-optimal for awkward batch sizes.
    """
    min_rows = n if n < 8 else 8
    if l <= 128 or l * min_rows * itemsize <= budget_bytes:
        tl = l                                     # full rows fit the budget
    else:
        tl = (budget_bytes // (min_rows * itemsize)) // 128 * 128
        tl = max(128, min(tl, l))                  # multiple of 128 < l
    if n < 8:
        tn = n                                     # full (legal) sublane extent
    else:
        rows = budget_bytes // max(1, tl * itemsize)
        tn = int(min(n, max(8, (rows // 8) * 8)))  # multiple of 8 (or full n)
    return tn, tl


# ----------------------------------------------------------------------------
# Phase 1: per-column partial sum / sum-of-squares (megacore-safe, VPU-only)
# ----------------------------------------------------------------------------
def _stats_kernel(x_ref, sum_ref, sq_ref, *, n_total, tn):
    x = x_ref[...].astype(jnp.float32)             # (tn, tl)
    if n_total % tn:                               # cdiv tail: mask rows past N
        i = pl.program_id(0)
        row = jax.lax.broadcasted_iota(jnp.int32, x.shape, 0)
        x = jnp.where(i * tn + row < n_total, x, 0.0)
    # Row reduce = mostly plain VPU vreg adds; only one cross-sublane fold per
    # OUTPUT vreg (vs. the old per-streamed-vreg XLU lane reduce).
    sum_ref[0] = jnp.sum(x, axis=0, keepdims=True)
    sq_ref[0] = jnp.sum(x * x, axis=0, keepdims=True)


def _partial_moments(x2, tn, tl):
    n, l = x2.shape
    gi, gj = pl.cdiv(n, tn), pl.cdiv(l, tl)
    itemsize = x2.dtype.itemsize
    cost = pl.CostEstimate(
        flops=3 * n * l,
        transcendentals=0,
        bytes_accessed=n * l * itemsize + 2 * gi * l * 4,
    )
    kernel = functools.partial(_stats_kernel, n_total=n, tn=tn)
    return pl.pallas_call(
        kernel,
        out_shape=(jax.ShapeDtypeStruct((gi, 1, l), jnp.float32),
                   jax.ShapeDtypeStruct((gi, 1, l), jnp.float32)),
        grid=(gi, gj),
        in_specs=[pl.BlockSpec((tn, tl), lambda i, j: (i, j))],
        out_specs=(pl.BlockSpec((1, 1, tl), lambda i, j: (i, 0, j)),
                   pl.BlockSpec((1, 1, tl), lambda i, j: (i, 0, j))),
        compiler_params=pltpu.CompilerParams(
            dimension_semantics=("parallel", "parallel"),   # both TCs on v7x
            vmem_limit_bytes=_VMEM_LIMIT),
        cost_estimate=cost,
    )(x2)


# ----------------------------------------------------------------------------
# Phase 2: out = x + shift   (shift pre-expanded to a lane-dense (1, L) row)
# ----------------------------------------------------------------------------
def _center_kernel(x_ref, shift_ref, out_ref):
    x = x_ref[...].astype(jnp.float32)
    out_ref[...] = (x + shift_ref[...]).astype(out_ref.dtype)


def _center_add(x2, shift2, tn, tl):
    n, l = x2.shape
    gi, gj = pl.cdiv(n, tn), pl.cdiv(l, tl)
    itemsize = x2.dtype.itemsize
    cost = pl.CostEstimate(
        flops=n * l,
        transcendentals=0,
        bytes_accessed=2 * n * l * itemsize + gi * l * 4,
    )
    return pl.pallas_call(
        _center_kernel,
        out_shape=jax.ShapeDtypeStruct((n, l), x2.dtype),
        grid=(gi, gj),
        in_specs=[pl.BlockSpec((tn, tl), lambda i, j: (i, j)),
                  pl.BlockSpec((1, tl), lambda i, j: (0, j))],
        out_specs=pl.BlockSpec((tn, tl), lambda i, j: (i, j)),
        compiler_params=pltpu.CompilerParams(
            dimension_semantics=("parallel", "parallel"),
            vmem_limit_bytes=_VMEM_LIMIT),
        cost_estimate=cost,
    )(x2, shift2)


# ----------------------------------------------------------------------------
# Module forward
# ----------------------------------------------------------------------------
def my_batch_mean_forward(x_nchw, mybias, run_mean, run_var, momentum=0.1,
                          training=True, affine=True):
    """Forward of MyBatchMeanLayer.

    x_nchw:   (N, C, H, W)
    mybias:   (1, C, 1, 1) or None
    run_mean: (1, C, 1, 1)
    run_var:  (1, C, 1, 1)
    Returns (output_nchw, new_run_mean, new_run_var).
    """
    n, c, h, w = x_nchw.shape
    hw = h * w
    l = c * hw
    x2 = x_nchw.reshape(n, l)                  # free contiguous reshape; lane-dense
    itemsize = x2.dtype.itemsize

    if affine and mybias is not None:
        beta_c = mybias.reshape(c).astype(jnp.float32)
    else:
        beta_c = jnp.zeros((c,), jnp.float32)  # beta=None <=> add 0

    mean_c = std_c = None
    if training:
        tn1, tl1 = _pick_tiles(n, l, itemsize, _STATS_TILE_BUDGET)
        psum, psq = _partial_moments(x2, tn1, tl1)          # (gi, 1, L) each
        gi = psum.shape[0]
        s = jnp.sum(psum.reshape(gi, c, hw), axis=(0, 2))   # (C,) tiny JAX fold
        q = jnp.sum(psq.reshape(gi, c, hw), axis=(0, 2))
        inv_m = 1.0 / float(n * hw)
        mean_c = s * inv_m
        # single-pass variance; clamp against catastrophic cancellation
        var_c = jnp.maximum(q * inv_m - mean_c * mean_c, 0.0)
        std_c = jnp.sqrt(var_c) + 1e-5
        shift_c = beta_c - mean_c
    else:
        shift_c = beta_c - run_mean.reshape(c).astype(jnp.float32)

    # Lane-dense per-element shift row (1, C*HW); tiny, built once in XLA.
    shift2 = jnp.repeat(shift_c, hw).reshape(1, l)

    tn2, tl2 = _pick_tiles(n, l, itemsize, _CENTER_TILE_BUDGET)
    out2 = _center_add(x2, shift2, tn2, tl2)
    out = out2.reshape(n, c, h, w)

    if training:
        mean4 = mean_c.reshape(1, c, 1, 1).astype(run_mean.dtype)
        std4 = std_c.reshape(1, c, 1, 1).astype(run_var.dtype)
        new_run_mean = run_mean * (1.0 - momentum) + momentum * mean4
        new_run_var = run_var * (1.0 - momentum) + momentum * std4
        return out, new_run_mean, new_run_var
    return out, run_mean, run_var


if __name__ == "__main__":
    key = jax.random.PRNGKey(0)
    N, C, H, W = 2, 4, 16, 16

    x = jax.random.normal(key, (N, C, H, W), dtype=jnp.float32)

    # Deterministic parameter / buffer init matching reset_parameters():
    mybias = jnp.zeros((1, C, 1, 1), jnp.float32)      # nn.init.zeros_
    run_mean = jnp.zeros((1, C, 1, 1), jnp.float32)    # reset_running_stats
    run_var = jnp.ones((1, C, 1, 1), jnp.float32)

    out, new_rm, new_rv = my_batch_mean_forward(
        x, mybias, run_mean, run_var, momentum=0.1, training=True, affine=True)
    jax.block_until_ready((out, new_rm, new_rv))

    # Pure-JAX reference (matches the PyTorch module: "var" is std + 1e-5)
    mean_ref = jnp.mean(x, axis=(0, 2, 3), keepdims=True)
    var_ref = jnp.sqrt(jnp.mean((x - mean_ref) ** 2,
                                axis=(0, 2, 3), keepdims=True)) + 1e-5
    out_ref = (x - mean_ref) + mybias
    assert jnp.allclose(out, out_ref, atol=1e-5), "output mismatch"
    assert jnp.allclose(new_rm, run_mean * 0.9 + 0.1 * mean_ref, atol=1e-5)
    assert jnp.allclose(new_rv, run_var * 0.9 + 0.1 * var_ref, atol=1e-5)

    # Eval-path smoke test (plain streaming add kernel)
    out_eval, _, _ = my_batch_mean_forward(
        x, mybias, new_rm, new_rv, momentum=0.1, training=False, affine=True)
    jax.block_until_ready(out_eval)
    assert jnp.allclose(out_eval, x - new_rm + mybias, atol=1e-5)

    print("KERNEL_OK")
</pallas_src>

<mosaic_0001>
module attributes {stable_mosaic.version = 11 : i64} {
  func.func @_stats_kernel(%arg0: i32, %arg1: i32, %arg2: memref<2x1024xf32, #tpu.memory_space<vmem>>, %arg3: memref<1x1x1024xf32, #tpu.memory_space<vmem>>, %arg4: memref<1x1x1024xf32, #tpu.memory_space<vmem>>) attributes {dimension_semantics = [#tpu.dimension_semantics<parallel>, #tpu.dimension_semantics<parallel>], iteration_bounds = array<i64: 1, 1>, scalar_prefetch = 0 : i64, scratch_operands = 0 : i64, tpu.core_type = #tpu.core_type<tc>, window_params = [{transform_indices = @transform_0, window_bounds = array<i64: 2, 1024>}, {transform_indices = @transform_1, window_bounds = array<i64: 1, 1, 1024>}, {transform_indices = @transform_2, window_bounds = array<i64: 1, 1, 1024>}]} {
    %c0 = arith.constant 0 : index
    %c0_0 = arith.constant 0 : index
    %0 = vector.load %arg2[%c0, %c0_0] : memref<2x1024xf32, #tpu.memory_space<vmem>>, vector<2x1024xf32>
    %cst = arith.constant dense<0.000000e+00> : vector<1024xf32>
    %1 = vector.multi_reduction <add>, %0, %cst [0] : vector<2x1024xf32> to vector<1024xf32>
    %2 = vector.shape_cast %1 : vector<1024xf32> to vector<1x1024xf32>
    %c0_1 = arith.constant 0 : index
    %c0_2 = arith.constant 0 : index
    %c0_3 = arith.constant 0 : index
    %3 = vector.load %arg3[%c0_1, %c0_2, %c0_3] : memref<1x1x1024xf32, #tpu.memory_space<vmem>>, vector<1x1x1024xf32>
    %4 = vector.shape_cast %3 : vector<1x1x1024xf32> to vector<1x1024xf32>
    %5 = vector.shape_cast %2 : vector<1x1024xf32> to vector<1x1x1024xf32>
    tpu.vector_store %arg3[%c0_1, %c0_2, %c0_3], %5 {strides = array<i32>} : memref<1x1x1024xf32, #tpu.memory_space<vmem>>, vector<1x1x1024xf32>,
    %6 = arith.mulf %0, %0 : vector<2x1024xf32>
    %cst_4 = arith.constant dense<0.000000e+00> : vector<1024xf32>
    %7 = vector.multi_reduction <add>, %6, %cst_4 [0] : vector<2x1024xf32> to vector<1024xf32>
    %8 = vector.shape_cast %7 : vector<1024xf32> to vector<1x1024xf32>
    %c0_5 = arith.constant 0 : index
    %c0_6 = arith.constant 0 : index
    %c0_7 = arith.constant 0 : index
    %9 = vector.load %arg4[%c0_5, %c0_6, %c0_7] : memref<1x1x1024xf32, #tpu.memory_space<vmem>>, vector<1x1x1024xf32>
    %10 = vector.shape_cast %9 : vector<1x1x1024xf32> to vector<1x1024xf32>
    %11 = vector.shape_cast %8 : vector<1x1024xf32> to vector<1x1x1024xf32>
    tpu.vector_store %arg4[%c0_5, %c0_6, %c0_7], %11 {strides = array<i32>} : memref<1x1x1024xf32, #tpu.memory_space<vmem>>, vector<1x1x1024xf32>,
    return
  }
  func.func @transform_0(%arg0: i32, %arg1: i32) -> (i32, i32) {
    %c0_i32 = arith.constant 0 : i32
    return %arg0, %arg1 : i32, i32
  }
  func.func @transform_1(%arg0: i32, %arg1: i32) -> (i32, i32, i32) {
    %c0_i32 = arith.constant 0 : i32
    %c0_i32_0 = arith.constant 0 : i32
    return %arg0, %c0_i32, %arg1 : i32, i32, i32
  }
  func.func @transform_2(%arg0: i32, %arg1: i32) -> (i32, i32, i32) {
    %c0_i32 = arith.constant 0 : i32
    %c0_i32_0 = arith.constant 0 : i32
    return %arg0, %c0_i32, %arg1 : i32, i32, i32
  }
}

</mosaic_0001>

<bundles_post_ra>
// kernel: tpu_custom_call.1
= control target key start
LH: loop header
LB: loop body
LE: loop exit
PB: predicated region body
PF: predicated region fallthrough
CT: control target
= control target key end

     0   :  { %8 = vsyncpa [#allocation3], 0  ;;  %s528_s0 = inlined_call_operand.hbm [shape: f32[2,1024], index: 0, kind: input, shape index: {}]   ;;  %s529_s1 = inlined_call_operand.hbm [shape: f32[1,1,1024], index: 1, kind: output, shape index: {0}]   ;;  %s530_s2 = inlined_call_operand.hbm [shape: f32[1,1,1024], index: 2, kind: output, shape index: {1}]  }
   0x1   :  { %9 = vsyncpa [#allocation4], 0 }
   0x2   :  { %10 = vsyncpa [#allocation7], 0  ;;  %s449_s9 = smov [#allocation2]  }
   0x3   :  { %s17_s10 = sshll.u32 %s449_s9, 4  ;;  %s18_s10 = int_to_ptr.vmem [resolvable:$true] %s17_s10 }
   0x4   :  { %s391_s11 = scalar_lea.vmem %s18_s10, 256  ;;  %p396_p1 = scmp.lt.s32.totalorder %s18_s10, %s18_s10 }
   0x5   :  { %p392_p0 = scmp.ne.s32.totalorder %s18_s10, %s391_s11  ;;  %p397_p2 = scmp.lt.s32.totalorder %s391_s11, %s391_s11 }
   0x7   :  { %p398_p3 = por %p397_p2, %p396_p1 }
   0x9   :  { %p399_p4 = pnand %p398_p3, %p392_p0 }
   0xb   :  { %402 = shalt.err (!%p399_p4)
}
   0xc   :  { %20 = dma.hbm_to_vmem [thread:$0]  %s528_s0, 256, %s18_s10, [#allocation3]  }
   0xd   :  { %443 = dma.done.wait [#allocation3], 256  }
   0xe   :  { %444 = vsyncadd [#allocation3], 4294967040  ;;  %v32_v0 = vlaneseq  ;;  %v450_v1 = vmov 1983009808   ;;  %v451_v4 = vmov 1966171168  }
   0xf   :  { %v30_v2 = vunpack.c.l.s4 %v450_v1  ;;  %v140_v5 = vunpack.c.l.s4 %v451_v4  ;;  %v24_v9 = vld [vmem:[#allocation2] sm:$0xff]  ;;  %v25_v10 = vld [vmem:[#allocation2 + $0x8] sm:$0xff]  ;;  %vm70_vm0 = vcmask 1041408   ;;  %s452_s0 = smov [#allocation5]  }
  0x10   :  { %v33_v3 = vshrl.u32 %v32_v0, 7  ;;  %v28_v11 = vcombine.high %v24_v9, %v24_v9  ;;  %v45_v13 = vcombine.high %v25_v10, %v25_v10  ;;  %v186_v16 = vmul.f32 %v24_v9, %v24_v9  ;;  %s353_s14 = sshll.u32 %s452_s0, 4  ;;  %s354_s14 = int_to_ptr.vmem [resolvable:$true] %s353_s14 }
  0x11   :  { %v31_v6 = vunpack.c.0.s8 %v30_v2  ;;  %v141_v8 = vunpack.c.0.s8 %v140_v5  ;;  %v478_v17 = vmul.f32 %v25_v10, %v25_v10  ;;  %s403_s15 = scalar_lea.vmem %s354_s14, 128  ;;  %p408_p6 = scmp.lt.s32.totalorder %s354_s14, %s354_s14 }
  0x12   :  { %v190_v24 = vcombine.high %v186_v16, %v186_v16  ;;  %p404_p5 = scmp.ne.s32.totalorder %s354_s14, %s403_s15  ;;  %p409_p7 = scmp.lt.s32.totalorder %s403_s15, %s403_s15 }
  0x13   :  { %v472_v7 = vsub.s32 %v31_v6, %v33_v3  ;;  %v476_v15 = vsub.s32 %v141_v8, %v33_v3 }
  0x14   :  { %p410_p8 = por %p409_p7, %p408_p6 }
  0x15   :  { %v35_v12 = vrot.slane %v24_v9, %v472_v7  ;;  %v52_v14 = vrot.slane %v25_v10, %v472_v7  ;;  %v42_v18 = vrot.slane %v28_v11, %v472_v7  ;;  %v59_v20 = vrot.slane %v45_v13, %v472_v7 }
  0x16   :  { %v485_v25 = vrot.slane %v186_v16, %v472_v7  ;;  %p411_p9 = pnand %p410_p8, %p404_p5 }
  0x17   :  { %v43_v19 = vcombine.high %v35_v12, %v35_v12  ;;  %v60_v21 = vcombine.high %v52_v14, %v52_v14  ;;  %v71_v22 = vsel %vm70_vm0, %v35_v12, 0.0  ;;  %v99_v23 = vsel %vm70_vm0, %v52_v14, 0.0 }
  0x18   :  { %v44_v26 = vcombine.high %v42_v18, %v42_v18  ;;  %v61_v27 = vcombine.high %v59_v20, %v59_v20  ;;  %v72_v28 = vrot.slane %v71_v22, 4  ;;  %v85_v31 = vsel %vm70_vm0, %v42_v18, 0.0 }
  0x19   :  { %v78_v29 = vsel %vm70_vm0, %v43_v19, 0.0  ;;  %v100_v32 = vrot.slane %v99_v23, 4  ;;  %v106_v33 = vsel %vm70_vm0, %v60_v21, 0.0  ;;  %v86_v35 = vrot.slane %v85_v31, 4 }
  0x1a   :  { %v79_v30 = vrot.slane %v78_v29, 4  ;;  %v73_v34 = vadd.f32 %v72_v28, %v71_v22  ;;  %v92_v36 = vsel %vm70_vm0, %v44_v26, 0.0  ;;  %v107_v37 = vrot.slane %v106_v33, 4 }
  0x1b   :  { %v93_v39 = vrot.slane %v92_v36, 4  ;;  %v101_v40 = vadd.f32 %v100_v32, %v99_v23  ;;  %v113_v41 = vsel %vm70_vm0, %v59_v20, 0.0  ;;  %v87_v43 = vadd.f32 %v86_v35, %v85_v31 }
  0x1c   :  { %v80_v38 = vadd.f32 %v79_v30, %v78_v29  ;;  %v74_v42 = vrot.slane %v73_v34, 2  ;;  %v108_v44 = vadd.f32 %v107_v37, %v106_v33  ;;  %v114_v45 = vrot.slane %v113_v41, 4 }
  0x1d   :  { %v94_v47 = vadd.f32 %v93_v39, %v92_v36  ;;  %v102_v48 = vrot.slane %v101_v40, 2  ;;  %v120_v49 = vsel %vm70_vm0, %v61_v27, 0.0  ;;  %v88_v51 = vrot.slane %v87_v43, 2 }
  0x1e   :  { %v81_v46 = vrot.slane %v80_v38, 2  ;;  %v75_v50 = vadd.f32 %v74_v42, %v73_v34  ;;  %v109_v52 = vrot.slane %v108_v44, 2  ;;  %v115_v53 = vadd.f32 %v114_v45, %v113_v41 }
  0x1f   :  { %v95_v55 = vrot.slane %v94_v47, 2  ;;  %v103_v56 = vadd.f32 %v102_v48, %v101_v40  ;;  %v121_v57 = vrot.slane %v120_v49, 4  ;;  %v89_v59 = vadd.f32 %v88_v51, %v87_v43 }
  0x20   :  { %v82_v54 = vadd.f32 %v81_v46, %v80_v38  ;;  %v76_v58 = vrot.slane %v75_v50, 1  ;;  %v110_v60 = vadd.f32 %v109_v52, %v108_v44  ;;  %v116_v61 = vrot.slane %v115_v53, 2 }
  0x21   :  { %v96_v63 = vadd.f32 %v95_v55, %v94_v47  ;;  %v104_v0 = vrot.slane %v103_v56, 1  ;;  %v122_v1 = vadd.f32 %v121_v57, %v120_v49  ;;  %v90_v3 = vrot.slane %v89_v59, 1 }
  0x22   :  { %v83_v62 = vrot.slane %v82_v54, 1  ;;  %v77_v2 = vadd.f32 %v76_v58, %v75_v50  ;;  %v111_v4 = vrot.slane %v110_v60, 1  ;;  %v117_v5 = vadd.f32 %v116_v61, %v115_v53 }
  0x23   :  { %v97_v8 = vrot.slane %v96_v63, 1  ;;  %v105_v9 = vadd.f32 %v104_v0, %v103_v56  ;;  %v123_v10 = vrot.slane %v122_v1, 2  ;;  %v91_v11 = vadd.f32 %v90_v3, %v89_v59 }
  0x24   :  { %v84_v6 = vadd.f32 %v83_v62, %v82_v54  ;;  %v112_v12 = vadd.f32 %v111_v4, %v110_v60  ;;  %v118_v13 = vrot.slane %v117_v5, 1  ;;  %v204_v14 = vrot.slane %v190_v24, %v472_v7 }
  0x25   :  { %v98_v16 = vadd.f32 %v97_v8, %v96_v63  ;;  %v124_v18 = vadd.f32 %v123_v10, %v122_v1  ;;  %v205_v20 = vcombine.high %v485_v25, %v485_v25  ;;  %v207_v26 = vcombine.high %v478_v17, %v478_v17 }
  0x26   :  { %v135_v19 = vcombine.low %v77_v2, %v84_v6  ;;  %v119_v21 = vadd.f32 %v118_v13, %v117_v5  ;;  %v137_v22 = vcombine.low %v105_v9, %v112_v12  ;;  %v206_v23 = vcombine.high %v204_v14, %v204_v14 }
  0x27   :  { %v125_v27 = vrot.slane %v124_v18, 1  ;;  %v136_v28 = vcombine.low %v91_v11, %v98_v16  ;;  %v214_v30 = vrot.slane %v478_v17, %v472_v7  ;;  %v221_v31 = vrot.slane %v207_v26, %v472_v7 }
  0x28   :  { %v145_v29 = vrot.slane %v135_v19, %v476_v15  ;;  %v159_v24 = vrot.slane %v137_v22, %v476_v15  ;;  %v232_v32 = vsel %vm70_vm0, %v485_v25, 0.0  ;;  %v239_v33 = vsel %vm70_vm0, %v205_v20, 0.0 }
  0x29   :  { %v126_v34 = vadd.f32 %v125_v27, %v124_v18  ;;  %v152_v35 = vrot.slane %v136_v28, %v476_v15  ;;  %v222_v36 = vcombine.high %v214_v30, %v214_v30  ;;  %v233_v37 = vrot.slane %v232_v32, 4 }
  0x2a   :  { %v223_v38 = vcombine.high %v221_v31, %v221_v31  ;;  %v240_v39 = vrot.slane %v239_v33, 4  ;;  %v246_v40 = vsel %vm70_vm0, %v204_v14, 0.0  ;;  %v253_v17 = vsel %vm70_vm0, %v206_v23, 0.0 }
  0x2b   :  { %v138_v41 = vcombine.low %v119_v21, %v126_v34  ;;  %v167_v42 = vcombine.low %v145_v29, %v152_v35  ;;  %v234_v43 = vadd.f32 %v233_v37, %v232_v32  ;;  %v247_v7 = vrot.slane %v246_v40, 4 }
  0x2c   :  { %v241_v44 = vadd.f32 %v240_v39, %v239_v33  ;;  %v254_v45 = vrot.slane %v253_v17, 4  ;;  %v260_v25 = vsel %vm70_vm0, %v214_v30, 0.0  ;;  %v267_v46 = vsel %vm70_vm0, %v222_v36, 0.0 }
  0x2d   :  { %v166_v47 = vrot.slane %v138_v41, %v476_v15  ;;  %v175_v48 = vrot.slane %v167_v42, %v476_v15  ;;  %v235_v49 = vrot.slane %v234_v43, 2  ;;  %v248_v50 = vadd.f32 %v247_v7, %v246_v40 }
  0x2e   :  { %v242_v51 = vrot.slane %v241_v44, 2  ;;  %v255_v52 = vadd.f32 %v254_v45, %v253_v17  ;;  %v261_v53 = vrot.slane %v260_v25, 4  ;;  %v268_v54 = vrot.slane %v267_v46, 4 }
  0x2f   :  { %v168_v55 = vcombine.low %v159_v24, %v166_v47  ;;  %v236_v56 = vadd.f32 %v235_v49, %v234_v43  ;;  %v249_v57 = vrot.slane %v248_v50, 2  ;;  %v274_v58 = vsel %vm70_vm0, %v221_v31, 0.0 }
  0x30   :  { %v243_v59 = vadd.f32 %v242_v51, %v241_v44  ;;  %v256_v60 = vrot.slane %v255_v52, 2  ;;  %v262_v61 = vadd.f32 %v261_v53, %v260_v25  ;;  %v269_v62 = vadd.f32 %v268_v54, %v267_v46 }
  0x31   :  { %v182_v63 = vrot.slane %v168_v55, %v476_v15  ;;  %v237_v0 = vrot.slane %v236_v56, 1  ;;  %v250_v1 = vadd.f32 %v249_v57, %v248_v50  ;;  %v275_v2 = vrot.slane %v274_v58, 4 }
  0x32   :  { %v244_v3 = vrot.slane %v243_v59, 1  ;;  %v257_v4 = vadd.f32 %v256_v60, %v255_v52  ;;  %v263_v5 = vrot.slane %v262_v61, 2  ;;  %v270_v6 = vrot.slane %v269_v62, 2 }
  0x33   :  { %v183_v8 = vcombine.low %v175_v48, %v182_v63  ;;  %v251_v9 = vrot.slane %v250_v1, 1  ;;  %v276_v10 = vadd.f32 %v275_v2, %v274_v58  ;;  %v238_v11 = vadd.f32 %v237_v0, %v236_v56 }
  0x34   :  { %v258_v12 = vrot.slane %v257_v4, 1  ;;  %v264_v13 = vadd.f32 %v263_v5, %v262_v61  ;;  %v271_v14 = vadd.f32 %v270_v6, %v269_v62  ;;  %v245_v16 = vadd.f32 %v244_v3, %v243_v59 }
  0x35   :  { %185 = vst [vmem:[#allocation5] sm:$0xff] %v183_v8  ;;  %v252_v18 = vadd.f32 %v251_v9, %v250_v1  ;;  %v277_v19 = vrot.slane %v276_v10, 2  ;;  %v281_v20 = vsel %vm70_vm0, %v223_v38, 0.0 }
  0x36   :  { %v259_v21 = vadd.f32 %v258_v12, %v257_v4  ;;  %v265_v22 = vrot.slane %v264_v13, 1  ;;  %v272_v23 = vrot.slane %v271_v14, 1  ;;  %v282_v26 = vrot.slane %v281_v20, 4 }
  0x37   :  { %414 = shalt.err (!%p411_p9)
}
  0x38   :  { %356 = dma.vmem_to_hbm [thread:$0]  %s354_s14, 128, %s529_s1, [#allocation4]   ;;  %v278_v27 = vadd.f32 %v277_v19, %v276_v10  ;;  %v283_v28 = vadd.f32 %v282_v26, %v281_v20  ;;  %v266_v29 = vadd.f32 %v265_v22, %v264_v13  ;;  %v296_v30 = vcombine.low %v238_v11, %v245_v16 }
  0x39   :  { %v273_v24 = vadd.f32 %v272_v23, %v271_v14  ;;  %v297_v33 = vcombine.low %v252_v18, %v259_v21  ;;  %s453_s1 = smov [#allocation6]  }
  0x3a   :  { %v279_v31 = vrot.slane %v278_v27, 1  ;;  %v284_v32 = vrot.slane %v283_v28, 2  ;;  %v306_v35 = vrot.slane %v296_v30, %v476_v15  ;;  %s363_s18 = sshll.u32 %s453_s1, 4  ;;  %s364_s18 = int_to_ptr.vmem [resolvable:$true] %s363_s18 }
  0x3b   :  { %v298_v38 = vcombine.low %v266_v29, %v273_v24  ;;  %v313_v39 = vrot.slane %v297_v33, %v476_v15  ;;  %s423_s19 = scalar_lea.vmem %s364_s18, 128  ;;  %p428_p11 = scmp.lt.s32.totalorder %s364_s18, %s364_s18 }
  0x3c   :  { %v285_v34 = vadd.f32 %v284_v32, %v283_v28  ;;  %v280_v36 = vadd.f32 %v279_v31, %v278_v27  ;;  %p424_p10 = scmp.ne.s32.totalorder %s364_s18, %s423_s19  ;;  %p429_p12 = scmp.lt.s32.totalorder %s423_s19, %s423_s19 }
  0x3d   :  { %v320_v41 = vrot.slane %v298_v38, %v476_v15  ;;  %v328_v42 = vcombine.low %v306_v35, %v313_v39 }
  0x3e   :  { %v286_v37 = vrot.slane %v285_v34, 1  ;;  %p430_p13 = por %p429_p12, %p428_p11 }
  0x3f   :  { %v336_v44 = vrot.slane %v328_v42, %v476_v15 }
  0x40   :  { %v287_v40 = vadd.f32 %v286_v37, %v285_v34  ;;  %p431_p0 = pnand %p430_p13, %p424_p10 }
  0x42   :  { %v299_v17 = vcombine.low %v280_v36, %v287_v40 }
  0x44   :  { %v327_v43 = vrot.slane %v299_v17, %v476_v15 }
  0x46   :  { %v329_v7 = vcombine.low %v320_v41, %v327_v43 }
  0x48   :  { %v343_v45 = vrot.slane %v329_v7, %v476_v15 }
  0x4a   :  { %v344_v25 = vcombine.low %v336_v44, %v343_v45 }
  0x4c   :  { %346 = vst [vmem:[#allocation6] sm:$0xff] %v344_v25 }
  0x4d   :  { %434 = shalt.err (!%p431_p0)
}
  0x4e   :  { %366 = dma.vmem_to_hbm [thread:$0]  %s364_s18, 128, %s530_s2, [#allocation7]  }
  0x4f   :  { %445 = dma.done.wait [#allocation4], 128  }
  0x50   :  { %446 = vsyncadd [#allocation4], 4294967168 }
  0x51   :  { %447 = dma.done.wait [#allocation7], 128  }
  0x52   :  { %448 = vsyncadd [#allocation7], 4294967168 }
  0x53   :  { %373 = vsyncpa [#allocation3], 1 }
  0x54   :  { %374 = vsyncpa [#allocation4], 1 }
  0x55   :  { %375 = vsyncpa [#allocation7], 1 }

</bundles_post_ra>
